<compile_context>
chip_gen: v6e
topology: v6e:2x2x1
jax: 0.10.0
libtpu: 0.0.40
codegen_flags: <defaults>
</compile_context>

<pallas_src>
import jax
import jax.numpy as jnp
from jax.experimental import pallas as pl
from jax.experimental.pallas import tpu as pltpu


def _copy_kernel(x_ref, o_ref):
    # Pure streaming copy of one (TM, TL) tile; the chomp is done by the
    # grid / index_map over the (N*C, L_out) output, not inside the kernel.
    o_ref[...] = x_ref[...]


def _round_up(a: int, b: int) -> int:
    return ((a + b - 1) // b) * b


def chomp1d(x: jax.Array, chomp_size: int) -> jax.Array:
    """Pallas equivalent of Chomp1d(chomp_size)(x) for x of shape (N, C, L)."""
    n, c, l = x.shape
    assert 0 <= chomp_size < l, "chomp_size must be in [0, L)"
    if chomp_size == 0:
        # Literal PyTorch semantics: x[:, :, :-0] == x[:, :, :0] (empty).
        return x[:, :, :0]
    l_out = l - chomp_size

    # Flatten batch and channel: the chomp acts only on the last (lane) axis,
    # and (N, C, L) is row-major contiguous, so this reshape is free.
    nc = n * c
    x2 = x.reshape(nc, l)

    itemsize = jnp.dtype(x.dtype).itemsize
    # Sublane multiple for packed dtypes: 8 (32-bit), 16 (16-bit), 32 (8-bit).
    sublane = {4: 8, 2: 16, 1: 32}.get(itemsize, 8)

    # ~4 MiB per block: per-step overhead (~0.35 us) stays <15% of HBM time
    # even at v7x's 3.2 TB/s; double-buffered in+out is ~16 MiB.
    target_block_bytes = 4 * 1024 * 1024

    # Lane tile first (contiguous axis -> long HBM bursts, fewer descriptors,
    # fewer masked edge blocks): full 128-rounded row if it fits the budget
    # with at least one sublane-group of rows.
    tl_full = _round_up(l_out, 128)
    tl_budget = max(128, (target_block_bytes // (sublane * itemsize)) // 128 * 128)
    tl = min(tl_full, tl_budget)

    # Sublane tile from the remaining budget, clamped to the (rounded) rows.
    tm = max(sublane, (target_block_bytes // (tl * itemsize)) // sublane * sublane)
    tm = min(tm, _round_up(nc, sublane))

    # v7x megacore: guarantee >= 2 blocks on a "parallel" axis so both
    # TensorCores participate (no-op on v5e/v6e, which have a single TC).
    if pl.cdiv(nc, tm) == 1 and pl.cdiv(l_out, tl) == 1 and nc > sublane:
        tm = _round_up(pl.cdiv(nc, 2), sublane)

    grid = (pl.cdiv(nc, tm), pl.cdiv(l_out, tl))

    out2 = pl.pallas_call(
        _copy_kernel,
        out_shape=jax.ShapeDtypeStruct((nc, l_out), x.dtype),
        grid_spec=pltpu.PrefetchScalarGridSpec(
            num_scalar_prefetch=0,
            grid=grid,
            # Identical lane-dense block shapes for input and output; the
            # grid only covers L_out, so the chomped tail is never streamed
            # (except within the single masked edge block along j).
            in_specs=[pl.BlockSpec((tm, tl), lambda i, j: (i, j))],
            out_specs=pl.BlockSpec((tm, tl), lambda i, j: (i, j)),
        ),
        compiler_params=pltpu.CompilerParams(
            dimension_semantics=("parallel", "parallel"),
            vmem_limit_bytes=48 * 1024 * 1024,
        ),
        # Pure-bandwidth op: zero FLOPs, read + write of the output footprint.
        cost_estimate=pl.CostEstimate(
            flops=0,
            transcendentals=0,
            bytes_accessed=2 * nc * l_out * itemsize,
        ),
    )(x2)

    return out2.reshape(n, c, l_out)


if __name__ == "__main__":
    key = jax.random.PRNGKey(0)

    # Test 1: toy shape matching the module's typical small input.
    batch, channels, length = 2, 4, 16
    chomp_size = 3  # Chomp1d has no learnable parameters.
    x = jax.random.normal(key, (batch, channels, length), dtype=jnp.float32)
    out = jax.block_until_ready(chomp1d(x, chomp_size))
    ref = x[:, :, :-chomp_size]
    assert out.shape == (batch, channels, length - chomp_size), out.shape
    assert out.dtype == x.dtype
    assert bool(jnp.array_equal(out, ref))

    # Test 2: bf16 with a non-128-aligned L_out to exercise edge-block
    # masking (block reads past both L_out and L) and 16-row packed tiling.
    k2 = jax.random.PRNGKey(1)
    xb = jax.random.normal(k2, (2, 8, 300), dtype=jnp.bfloat16)
    ob = jax.block_until_ready(chomp1d(xb, 7))
    rb = xb[:, :, :-7]
    assert ob.shape == (2, 8, 293) and ob.dtype == xb.dtype
    assert bool(jnp.array_equal(ob, rb))

    # Test 3: nc > sublane with an otherwise single-block grid, exercising
    # the >=2-block (megacore) row split.
    k3 = jax.random.PRNGKey(2)
    xc = jax.random.normal(k3, (2, 8, 160), dtype=jnp.float32)
    oc = jax.block_until_ready(chomp1d(xc, 32))
    rc = xc[:, :, :-32]
    assert oc.shape == (2, 8, 128) and oc.dtype == xc.dtype
    assert bool(jnp.array_equal(oc, rc))

    print("KERNEL_OK")
</pallas_src>

<mosaic_0001>
module attributes {stable_mosaic.version = 11 : i64} {
  func.func @_copy_kernel(%arg0: i32, %arg1: i32, %arg2: memref<8x128xf32, #tpu.memory_space<vmem>>, %arg3: memref<8x128xf32, #tpu.memory_space<vmem>>) attributes {dimension_semantics = [#tpu.dimension_semantics<parallel>, #tpu.dimension_semantics<parallel>], iteration_bounds = array<i64: 1, 1>, scalar_prefetch = 0 : i64, scratch_operands = 0 : i64, tpu.core_type = #tpu.core_type<tc>, window_params = [{transform_indices = @transform_0, window_bounds = array<i64: 8, 128>}, {transform_indices = @transform_1, window_bounds = array<i64: 8, 128>}]} {
    %c0 = arith.constant 0 : index
    %c0_0 = arith.constant 0 : index
    %0 = vector.load %arg2[%c0, %c0_0] : memref<8x128xf32, #tpu.memory_space<vmem>>, vector<8x128xf32>
    %c0_1 = arith.constant 0 : index
    %c0_2 = arith.constant 0 : index
    %1 = vector.load %arg3[%c0_1, %c0_2] : memref<8x128xf32, #tpu.memory_space<vmem>>, vector<8x128xf32>
    tpu.vector_store %arg3[%c0_1, %c0_2], %0 {strides = array<i32>} : memref<8x128xf32, #tpu.memory_space<vmem>>, vector<8x128xf32>,
    return
  }
  func.func @transform_0(%arg0: i32, %arg1: i32) -> (i32, i32) {
    %c0_i32 = arith.constant 0 : i32
    return %arg0, %arg1 : i32, i32
  }
  func.func @transform_1(%arg0: i32, %arg1: i32) -> (i32, i32) {
    %c0_i32 = arith.constant 0 : i32
    return %arg0, %arg1 : i32, i32
  }
}

</mosaic_0001>

<bundles_post_ra>
// kernel: tpu_custom_call.1
= control target key start
LH: loop header
LB: loop body
LE: loop exit
PB: predicated region body
PF: predicated region fallthrough
CT: control target
= control target key end

     0   :  { %6 = vsyncpa [#allocation3], 0  ;;  %s102_s0 = inlined_call_operand.hbm [shape: f32[8,16], index: 0, kind: input, shape index: {}]   ;;  %s103_s1 = inlined_call_operand.hbm [shape: f32[8,13], index: 1, kind: output, shape index: {}]  }
   0x1   :  { %7 = vsyncpa [#allocation4], 0  ;;  %s84_s6 = smov [#allocation2]  }
   0x2   :  { %s14_s7 = sshll.u32 %s84_s6, 4  ;;  %s15_s7 = int_to_ptr.vmem [resolvable:$true] %s14_s7 }
   0x3   :  { %s48_s8 = scalar_lea.vmem %s15_s7, 128  ;;  %p53_p1 = scmp.lt.s32.totalorder %s15_s7, %s15_s7 }
   0x4   :  { %p49_p0 = scmp.ne.s32.totalorder %s15_s7, %s48_s8  ;;  %p54_p2 = scmp.lt.s32.totalorder %s48_s8, %s48_s8 }
   0x6   :  { %p55_p3 = por %p54_p2, %p53_p1 }
   0x8   :  { %p56_p4 = pnand %p55_p3, %p49_p0 }
   0xa   :  { %59 = shalt.err (!%p56_p4)
}
   0xb   :  { %17 = dma.hbm_to_vmem [thread:$0]  %s102_s0, 128, %s15_s7, [#allocation3]  }
   0xc   :  { %80 = dma.done.wait [#allocation3], 128  }
   0xd   :  { %81 = vsyncadd [#allocation3], 4294967168  ;;  %s85_s11 = smov [#allocation5]   ;;  %v21_v0 = vld [vmem:[#allocation2] sm:$0xff] }
   0xe   :  { %s29_s12 = sshll.u32 %s85_s11, 4  ;;  %22 = vst [vmem:[#allocation5] sm:$0xff] %v21_v0  ;;  %s30_s12 = int_to_ptr.vmem [resolvable:$true] %s29_s12 }
   0xf   :  { %s60_s13 = scalar_lea.vmem %s30_s12, 128  ;;  %p65_p6 = scmp.lt.s32.totalorder %s30_s12, %s30_s12 }
  0x10   :  { %p61_p5 = scmp.ne.s32.totalorder %s30_s12, %s60_s13  ;;  %p66_p7 = scmp.lt.s32.totalorder %s60_s13, %s60_s13 }
  0x12   :  { %p67_p8 = por %p66_p7, %p65_p6 }
  0x14   :  { %p68_p9 = pnand %p67_p8, %p61_p5 }
  0x16   :  { %71 = shalt.err (!%p68_p9)
}
  0x17   :  { %32 = dma.vmem_to_hbm [thread:$0]  %s30_s12, 128, %s103_s1, [#allocation4]  }
  0x18   :  { %82 = dma.done.wait [#allocation4], 128  }
  0x19   :  { %83 = vsyncadd [#allocation4], 4294967168 }
  0x1a   :  { %36 = vsyncpa [#allocation3], 1 }
  0x1b   :  { %37 = vsyncpa [#allocation4], 1 }

</bundles_post_ra>
